<compile_context>
chip_gen: v5e
topology: v5e:2x2
jax: 0.10.0
libtpu: 0.0.40
codegen_flags: <defaults>
</compile_context>

<pallas_src>
import functools

import jax
import jax.numpy as jnp
from jax.experimental import pallas as pl
from jax.experimental.pallas import tpu as pltpu

LANES = 128
MAX_BLOCK_BYTES_PER_INPUT = 2 * 1024 * 1024   # ~2 MiB per input per step
VMEM_LIMIT_BYTES = 40 * 1024 * 1024           # safe on v7x (64 MiB physical)


def _round_up(x, m):
    return (x + m - 1) // m * m


def _num_tensorcores():
    """Best-effort TensorCores-per-chip (2 on v7x, 1 on v5e/v6e)."""
    try:
        info = pltpu.get_tpu_info()
        for attr in ("num_cores", "num_tensorcores", "tensorcores_per_chip",
                     "cores_per_chip", "core_count"):
            v = getattr(info, attr, None)
            if isinstance(v, int) and 1 <= v <= 8:
                return v
    except Exception:
        pass
    try:
        v = getattr(jax.devices()[0], "num_cores", None)
        if isinstance(v, int) and 1 <= v <= 8:
            return v
    except Exception:
        pass
    return 1


def _bce_kernel(pred_ref, gt_ref, out_ref, acc_ref, *, rows, row_tile, steps,
                total_blocks, inv_n, has_ragged_tail, has_duplicate_blocks):
    p = pl.program_id(0)       # partition (TensorCore) axis
    i = pl.program_id(1)       # sequential reduction axis
    block_idx = p * steps + i

    @pl.when(i == 0)
    def _init():
        acc_ref[...] = jnp.zeros_like(acc_ref)

    def _accumulate(vals):
        # Fold the (row_tile, LANES) block down to one (8, LANES) tile with
        # vreg-wise adds (same VALU add count as before) and add into the small
        # accumulator — no block-sized accumulator read-modify-write.
        acc_ref[...] += vals.reshape(row_tile // 8, 8, LANES).sum(axis=0)

    def _compute():
        pred = pred_ref[...].astype(jnp.float32)
        gt = gt_ref[...].astype(jnp.float32)
        # PyTorch clamps the log terms at -100 to avoid -inf.
        log_p = jnp.maximum(jnp.log(pred), -100.0)
        log_1mp = jnp.maximum(jnp.log(1.0 - pred), -100.0)
        loss = -(gt * log_p + (1.0 - gt) * log_1mp)

        if has_ragged_tail:
            is_tail = block_idx == total_blocks - 1

            @pl.when(is_tail)
            def _tail():
                # Rows past the end of the (rows, LANES) array are undefined
                # (possibly NaN after log); keep select (not mul-by-mask).
                row_ids = jax.lax.broadcasted_iota(jnp.int32, loss.shape, 0)
                in_range = (block_idx * row_tile + row_ids) < rows
                _accumulate(jnp.where(in_range, loss, 0.0))

            @pl.when(jnp.logical_not(is_tail))
            def _body():
                _accumulate(loss)
        else:
            _accumulate(loss)

    if has_duplicate_blocks:
        # Clamped duplicate blocks (over-partitioned grid) skip all EUP/VALU
        # work; their DMA window is clamped in bounds by the index_map.
        pl.when(block_idx < total_blocks)(_compute)
    else:
        _compute()

    @pl.when(i == steps - 1)
    def _finalize():
        out_ref[...] = acc_ref[...] * inv_n


def binary_cross_entropy(pred, gt):
    """Mean BCE over all elements (pred, gt same shape, pred in (0, 1))."""
    assert pred.shape == gt.shape
    n = pred.size
    inv_n = 1.0 / float(n)

    pred_flat = pred.reshape(-1)
    gt_flat = gt.reshape(-1)

    # Pad (a copy) only if N is not a multiple of the lane width. Zero padding
    # contributes exactly zero loss (gt=0, pred=0 => both clamped-log terms are
    # multiplied by 0 or are log(1)=0), so no lane masking is needed in-kernel.
    rem = n % LANES
    if rem:
        pad = LANES - rem
        pred_flat = jnp.pad(pred_flat, (0, pad))
        gt_flat = jnp.pad(gt_flat, (0, pad))

    rows = pred_flat.size // LANES
    pred2d = pred_flat.reshape(rows, LANES)   # contiguous -> free reshape
    gt2d = gt_flat.reshape(rows, LANES)

    itemsizes = [jnp.dtype(pred.dtype).itemsize, jnp.dtype(gt.dtype).itemsize]
    # Sublane alignment: 8 for 4-byte dtypes, 16 for bf16, 32 for int8/fp8.
    row_align = max(8, 32 // max(min(itemsizes), 1))
    # Cap each input block at ~2 MiB so double-buffered inputs plus compiler
    # temporaries fit comfortably in VMEM on every generation (v7x: 64 MiB).
    max_rows = MAX_BLOCK_BYTES_PER_INPUT // (LANES * max(itemsizes))
    max_row_tile = max(row_align, (max_rows // row_align) * row_align)

    row_tile = min(max_row_tile, _round_up(rows, row_align))
    total_blocks = pl.cdiv(rows, row_tile)

    num_parts = max(1, min(_num_tensorcores(), total_blocks))
    steps = pl.cdiv(total_blocks, num_parts)
    has_ragged_tail = (rows % row_tile) != 0
    has_duplicate_blocks = num_parts * steps != total_blocks

    kernel = functools.partial(
        _bce_kernel, rows=rows, row_tile=row_tile, steps=steps,
        total_blocks=total_blocks, inv_n=inv_n,
        has_ragged_tail=has_ragged_tail,
        has_duplicate_blocks=has_duplicate_blocks)

    if has_duplicate_blocks:
        def in_map(p, i):
            # Keep the DMA window of duplicate blocks in bounds; their compute
            # is skipped inside the kernel.
            return (jnp.minimum(p * steps + i, total_blocks - 1), 0)
    else:
        def in_map(p, i):
            return (p * steps + i, 0)

    # TODO(synk): on v7x, verify via xprof that both TensorCores are active; if
    # not, switch the leading axis to pltpu.CORE_PARALLEL.
    partials = pl.pallas_call(
        kernel,
        out_shape=jax.ShapeDtypeStruct((num_parts * 8, LANES), jnp.float32),
        grid_spec=pltpu.PrefetchScalarGridSpec(
            num_scalar_prefetch=0,
            grid=(num_parts, steps),
            in_specs=[
                pl.BlockSpec((row_tile, LANES), in_map),
                pl.BlockSpec((row_tile, LANES), in_map),
            ],
            out_specs=pl.BlockSpec((8, LANES), lambda p, i: (p, 0)),
            scratch_shapes=[pltpu.VMEM((8, LANES), jnp.float32)],
        ),
        compiler_params=pltpu.CompilerParams(
            dimension_semantics=("parallel", "arbitrary"),
            vmem_limit_bytes=VMEM_LIMIT_BYTES,
        ),
    )(pred2d, gt2d)

    # Tiny XLA epilogue: sum the already-1/N-scaled (num_parts*8, 128) partials.
    # NOTE: per-lane f32 accumulation differs slightly from PyTorch's reduction
    # order for very large N (loss scalar; ~1e-6 relative tolerance).
    return jnp.sum(partials)


def _reference_bce(pred, gt):
    p = pred.astype(jnp.float32)
    t = gt.astype(jnp.float32)
    log_p = jnp.maximum(jnp.log(p), -100.0)
    log_1mp = jnp.maximum(jnp.log(1.0 - p), -100.0)
    return jnp.mean(-(t * log_p + (1.0 - t) * log_1mp))


if __name__ == "__main__":
    key = jax.random.PRNGKey(0)
    k1, k2 = jax.random.split(key)

    # Small NCHW shapes: predictions in (0,1), targets in [0,1].
    shape = (2, 4, 16, 16)
    pred = jax.nn.sigmoid(jax.random.normal(k1, shape, dtype=jnp.float32))
    gt = jax.random.uniform(k2, shape, dtype=jnp.float32)

    loss = binary_cross_entropy(pred, gt)
    loss = jax.block_until_ready(loss)

    ref = _reference_bce(pred, gt)
    assert jnp.allclose(loss, ref, rtol=1e-5, atol=1e-6), (loss, ref)

    print("KERNEL_OK")
</pallas_src>

<mosaic_0001>
module attributes {stable_mosaic.version = 11 : i64} {
  func.func @_bce_kernel(%arg0: i32, %arg1: i32, %arg2: memref<16x128xf32, #tpu.memory_space<vmem>>, %arg3: memref<16x128xf32, #tpu.memory_space<vmem>>, %arg4: memref<8x128xf32, #tpu.memory_space<vmem>>, %arg5: memref<8x128xf32, #tpu.memory_space<vmem>>) attributes {dimension_semantics = [#tpu.dimension_semantics<parallel>, #tpu.dimension_semantics<arbitrary>], iteration_bounds = array<i64: 1, 1>, scalar_prefetch = 0 : i64, scratch_operands = 1 : i64, tpu.core_type = #tpu.core_type<tc>, window_params = [{transform_indices = @transform_0, window_bounds = array<i64: 16, 128>}, {transform_indices = @transform_1, window_bounds = array<i64: 16, 128>}, {transform_indices = @transform_2, window_bounds = array<i64: 8, 128>}]} {
    %c0_i32 = arith.constant 0 : i32
    %0 = arith.cmpi eq, %arg1, %c0_i32 : i32
    %1 = arith.extui %0 : i1 to i32
    %c0_i32_0 = arith.constant 0 : i32
    %2 = arith.cmpi ne, %1, %c0_i32_0 : i32
    scf.if %2 {
      %cst_15 = arith.constant 0.000000e+00 : f32
      %28 = vector.broadcast %cst_15 : f32 to vector<8x128xf32>
      %c0_16 = arith.constant 0 : index
      %c0_17 = arith.constant 0 : index
      %29 = vector.load %arg5[%c0_16, %c0_17] : memref<8x128xf32, #tpu.memory_space<vmem>>, vector<8x128xf32>
      tpu.vector_store %arg5[%c0_16, %c0_17], %28 {strides = array<i32>} : memref<8x128xf32, #tpu.memory_space<vmem>>, vector<8x128xf32>,
    } else {
    }
    %c0 = arith.constant 0 : index
    %c0_1 = arith.constant 0 : index
    %3 = vector.load %arg2[%c0, %c0_1] : memref<16x128xf32, #tpu.memory_space<vmem>>, vector<16x128xf32>
    %c0_2 = arith.constant 0 : index
    %c0_3 = arith.constant 0 : index
    %4 = vector.load %arg3[%c0_2, %c0_3] : memref<16x128xf32, #tpu.memory_space<vmem>>, vector<16x128xf32>
    %5 = math.log %3 : vector<16x128xf32>
    %cst = arith.constant -1.000000e+02 : f32
    %6 = vector.broadcast %cst : f32 to vector<16x128xf32>
    %7 = arith.maximumf %5, %6 : vector<16x128xf32>
    %cst_4 = arith.constant 1.000000e+00 : f32
    %8 = vector.broadcast %cst_4 : f32 to vector<16x128xf32>
    %9 = arith.subf %8, %3 : vector<16x128xf32>
    %10 = math.log %9 : vector<16x128xf32>
    %cst_5 = arith.constant -1.000000e+02 : f32
    %11 = vector.broadcast %cst_5 : f32 to vector<16x128xf32>
    %12 = arith.maximumf %10, %11 : vector<16x128xf32>
    %13 = arith.mulf %4, %7 : vector<16x128xf32>
    %cst_6 = arith.constant 1.000000e+00 : f32
    %14 = vector.broadcast %cst_6 : f32 to vector<16x128xf32>
    %15 = arith.subf %14, %4 : vector<16x128xf32>
    %16 = arith.mulf %15, %12 : vector<16x128xf32>
    %17 = arith.addf %13, %16 : vector<16x128xf32>
    %cst_7 = arith.constant 0.000000e+00 : f32
    %18 = vector.broadcast %cst_7 : f32 to vector<16x128xf32>
    %19 = arith.subf %18, %17 : vector<16x128xf32>
    %c0_8 = arith.constant 0 : index
    %c0_9 = arith.constant 0 : index
    %20 = vector.load %arg5[%c0_8, %c0_9] : memref<8x128xf32, #tpu.memory_space<vmem>>, vector<8x128xf32>
    %21 = vector.shape_cast %19 : vector<16x128xf32> to vector<2x8x128xf32>
    %cst_10 = arith.constant dense<0.000000e+00> : vector<8x128xf32>
    %22 = vector.multi_reduction <add>, %21, %cst_10 [0] : vector<2x8x128xf32> to vector<8x128xf32>
    %23 = arith.addf %20, %22 : vector<8x128xf32>
    %c0_11 = arith.constant 0 : index
    %c0_12 = arith.constant 0 : index
    %24 = vector.load %arg5[%c0_11, %c0_12] : memref<8x128xf32, #tpu.memory_space<vmem>>, vector<8x128xf32>
    tpu.vector_store %arg5[%c0_11, %c0_12], %23 {strides = array<i32>} : memref<8x128xf32, #tpu.memory_space<vmem>>, vector<8x128xf32>,
    %c0_i32_13 = arith.constant 0 : i32
    %25 = arith.cmpi eq, %arg1, %c0_i32_13 : i32
    %26 = arith.extui %25 : i1 to i32
    %c0_i32_14 = arith.constant 0 : i32
    %27 = arith.cmpi ne, %26, %c0_i32_14 : i32
    scf.if %27 {
      %c0_15 = arith.constant 0 : index
      %c0_16 = arith.constant 0 : index
      %28 = vector.load %arg5[%c0_15, %c0_16] : memref<8x128xf32, #tpu.memory_space<vmem>>, vector<8x128xf32>
      %cst_17 = arith.constant 4.8828125E-4 : f32
      %29 = vector.broadcast %cst_17 : f32 to vector<8x128xf32>
      %30 = arith.mulf %28, %29 : vector<8x128xf32>
      %c0_18 = arith.constant 0 : index
      %c0_19 = arith.constant 0 : index
      %31 = vector.load %arg4[%c0_18, %c0_19] : memref<8x128xf32, #tpu.memory_space<vmem>>, vector<8x128xf32>
      tpu.vector_store %arg4[%c0_18, %c0_19], %30 {strides = array<i32>} : memref<8x128xf32, #tpu.memory_space<vmem>>, vector<8x128xf32>,
    } else {
    }
    return
  }
  func.func @transform_0(%arg0: i32, %arg1: i32) -> (i32, i32) {
    %c1_i32 = arith.constant 1 : i32
    %0 = arith.muli %arg0, %c1_i32 : i32
    %1 = arith.addi %0, %arg1 : i32
    %c0_i32 = arith.constant 0 : i32
    %c0_i32_0 = arith.constant 0 : i32
    return %1, %c0_i32 : i32, i32
  }
  func.func @transform_1(%arg0: i32, %arg1: i32) -> (i32, i32) {
    %c1_i32 = arith.constant 1 : i32
    %0 = arith.muli %arg0, %c1_i32 : i32
    %1 = arith.addi %0, %arg1 : i32
    %c0_i32 = arith.constant 0 : i32
    %c0_i32_0 = arith.constant 0 : i32
    return %1, %c0_i32 : i32, i32
  }
  func.func @transform_2(%arg0: i32, %arg1: i32) -> (i32, i32) {
    %c0_i32 = arith.constant 0 : i32
    %c0_i32_0 = arith.constant 0 : i32
    return %arg0, %c0_i32 : i32, i32
  }
}

</mosaic_0001>

<bundles_post_ra>
// kernel: tpu_custom_call.1
= control target key start
LH: loop header
LB: loop body
LE: loop exit
PB: predicated region body
PF: predicated region fallthrough
CT: control target
= control target key end

     0   :  { %7 = vsyncpa [#allocation4], 0  ;;  %s237_s0 = inlined_call_operand.hbm [shape: f32[16,128], index: 0, kind: input, shape index: {}]   ;;  %s238_s1 = inlined_call_operand.hbm [shape: f32[16,128], index: 1, kind: input, shape index: {}]   ;;  %s239_s2 = inlined_call_operand.hbm [shape: f32[8,128], index: 2, kind: output, shape index: {}]  }
   0x1   :  { %8 = vsyncpa [#allocation7], 0 }
   0x2   :  { %9 = vsyncpa [#allocation5], 0  ;;  %s18_s11 = sshll.u32 %s237_s0, 4  ;;  %s208_s12 = smov [#allocation3]   ;;  %s19_s11 = int_to_ptr.hbm [resolvable:$true] %s18_s11 }
   0x3   :  { %s20_s13 = sshll.u32 %s208_s12, 4  ;;  %s35_s16 = sshll.u32 %s238_s1, 4  ;;  %s21_s13 = int_to_ptr.vmem [resolvable:$true] %s20_s13  ;;  %s36_s16 = int_to_ptr.hbm [resolvable:$true] %s35_s16 }
   0x4   :  { %s209_s17 = smov 128   ;;  %s210_s18 = smov 8  }
   0x5   :  { %26 = dma.hbm_to_vmem [thread:$0]  %s19_s11, 256, %s21_s13, [#allocation4], %s209_s17, %s209_s17, %s210_s18  }
   0x6   :  { %s211_s19 = smov [#allocation6]  }
   0x7   :  { %s37_s20 = sshll.u32 %s211_s19, 4  ;;  %s38_s20 = int_to_ptr.vmem [resolvable:$true] %s37_s20 }
   0x8   :  { %43 = dma.hbm_to_vmem [thread:$0]  %s36_s16, 256, %s38_s20, [#allocation7], %s209_s17, %s209_s17, %s210_s18  }
   0x9   :  { %202 = dma.done.wait [#allocation4], 256  }
   0xa   :  { %203 = vsyncadd [#allocation4], 4294967040 }
   0xb   :  { %204 = dma.done.wait [#allocation7], 256  }
   0xc   :  { %205 = vsyncadd [#allocation7], 4294967040  ;;  %v61_v0 = vld [vmem:[#allocation3] sm:$0xff]  ;;  %v62_v1 = vld [vmem:[#allocation3 + $0x8] sm:$0xff]  ;;  %s212_s0 = smov [#allocation8]   ;;  %s106_s23 = sshll.u32 %s239_s2, 4  ;;  %s107_s23 = int_to_ptr.hbm [resolvable:$true] %s106_s23 }
   0xd   :  { %122 = vlog2.f32 %v61_v0  ;;  %v71_v2 = vsub.f32 1.0, %v61_v0  ;;  %v72_v3 = vsub.f32 1.0, %v62_v1  ;;  %v63_v5 = vld [vmem:[#allocation6] sm:$0xff]  ;;  %v64_v7 = vld [vmem:[#allocation6 + $0x8] sm:$0xff]  ;;  %s104_s1 = sshll.u32 %s212_s0, 4  ;;  %s105_s1 = int_to_ptr.vmem [resolvable:$true] %s104_s1 }
   0xe   :  { %124 = vlog2.f32 %v62_v1  ;;  %v81_v14 = vsub.f32 1.0, %v63_v5  ;;  %v82_v17 = vsub.f32 1.0, %v64_v7 }
   0xf   :  { %126 = vlog2.f32 %v71_v2 }
  0x10   :  { %128 = vlog2.f32 %v72_v3 }
  0x13   :  { %v123_v4 = vpop.eup %122 }
  0x14   :  { %v125_v6 = vpop.eup %124  ;;  %v66_v8 = vmul.f32 0.6931472, %v123_v4 }
  0x15   :  { %v127_v9 = vpop.eup %126  ;;  %v68_v10 = vmul.f32 0.6931472, %v125_v6 }
  0x16   :  { %v129_v11 = vpop.eup %128  ;;  %v69_v12 = vmax.f32 %v66_v8, -100.0  ;;  %v74_v13 = vmul.f32 0.6931472, %v127_v9 }
  0x17   :  { %v70_v15 = vmax.f32 %v68_v10, -100.0  ;;  %v76_v16 = vmul.f32 0.6931472, %v129_v11 }
  0x18   :  { %v77_v18 = vmax.f32 %v74_v13, -100.0  ;;  %v79_v19 = vmul.f32 %v69_v12, %v63_v5 }
  0x19   :  { %v78_v20 = vmax.f32 %v76_v16, -100.0  ;;  %v80_v21 = vmul.f32 %v70_v15, %v64_v7 }
  0x1a   :  { %v83_v22 = vmul.f32 %v81_v14, %v77_v18 }
  0x1b   :  { %v84_v23 = vmul.f32 %v82_v17, %v78_v20 }
  0x1c   :  { %v85_v24 = vadd.f32 %v83_v22, %v79_v19 }
  0x1d   :  { %v86_v25 = vadd.f32 %v84_v23, %v80_v21 }
  0x1e   :  { %v87_v26 = vsub.f32 0.0, %v85_v24 }
  0x1f   :  { %v88_v27 = vsub.f32 0.0, %v86_v25 }
  0x21   :  { %v90_v28 = vadd.f32 %v88_v27, %v87_v26 }
  0x23   :  { %v97_v29 = vmul.f32 0.00048828125, %v90_v28 }
  0x25   :  { %98 = vst [vmem:[#allocation8] sm:$0xff] %v97_v29 }
  0x26   :  { %109 = dma.vmem_to_hbm [thread:$0]  %s105_s1, 128, %s107_s23, [#allocation5]  }
  0x27   :  { %206 = dma.done.wait [#allocation5], 128  }
  0x28   :  { %207 = vsyncadd [#allocation5], 4294967168 }
  0x29   :  { %114 = vsyncpa [#allocation4], 1 }
  0x2a   :  { %115 = vsyncpa [#allocation7], 1 }
  0x2b   :  { %116 = vsyncpa [#allocation5], 1 }

</bundles_post_ra>
